<compile_context>
chip_gen: v5e
topology: v5e:2x2
jax: 0.10.0
libtpu: 0.0.40
codegen_flags: <defaults>
</compile_context>

<pallas_src>
import jax
import jax.numpy as jnp
from jax.experimental import pallas as pl
from jax.experimental.pallas import tpu as pltpu


def cond_embed_kernel(units_ref, fv_ref, bias_ref, wu_ref, wfv_ref, o_ref):
    # units_ref: (tm, C_in) f32     fv_ref:  (tm, 2) f32  [log(1+f0/700) | vol]
    # bias_ref:  (1, H)     f32     (bu + bf + bv + spk_row, per batch)
    # wu_ref:    (C_in, H)  bf16    wfv_ref: (2, H)  f32  [wf ; wv]
    # o_ref:     (tm, H)    out_dtype

    # unit_embed: Linear(C_in -> H); bf16 operands, f32 accumulation (MXU).
    x = jnp.dot(units_ref[...].astype(jnp.bfloat16), wu_ref[...],
                preferred_element_type=jnp.float32)                  # (tm, H)

    # f0_embed / volume_embed: Linear(1 -> H) as two broadcast FMAs (VPU).
    x = x + fv_ref[:, 0:1] * wfv_ref[0:1, :]
    x = x + fv_ref[:, 1:2] * wfv_ref[1:2, :]

    # Folded bias: unit/f0/volume biases + speaker embedding row.
    x = x + bias_ref[...]

    o_ref[...] = x.astype(o_ref.dtype)


def _round_up(x, m):
    return ((x + m - 1) // m) * m


def unit2mel_v2_cond(units, f0, volume, spk_id, params, *, tm=1024,
                     out_dtype=jnp.bfloat16):
    """Unit2MelV2 conditioning tensor x: (B, T, H)."""
    B, T, C_in = units.shape
    H = params["wu"].shape[1]

    # Clamp the frame tile for short clips (keeps VMEM proportional to T);
    # tm stays a multiple of 8 so the (8,128) block constraint holds.
    tm = min(tm, _round_up(T, 256))
    n_t = pl.cdiv(T, tm)  # uneven trailing block handled by Pallas masking

    # ---- glue: gathers and parameter folding (single fused pass each) -----
    # f0 transform + volume as one lane-friendly (B, T, 2) tensor; the log is
    # fused into the same pass that materializes the concatenate.
    fv = jnp.concatenate([jnp.log1p(f0 / 700.0), volume], axis=-1)

    # nn.Embedding(n_spk, H) lookup of (spk_id - 1).
    # NOTE: jnp.take clamps out-of-range ids instead of raising like
    # torch.nn.Embedding would; callers must pass valid 1-based ids.
    spk_rows = jnp.take(params["spk_table"], spk_id.reshape(-1) - 1, axis=0)  # (B, H)
    bias_all = (params["bu"] + params["bf"] + params["bv"] + spk_rows)        # (B, H)
    bias_all = bias_all[:, None, :]                                           # (B, 1, H)

    wu_bf16 = params["wu"].astype(jnp.bfloat16)                               # (C_in, H)
    wfv = jnp.concatenate([params["wf"], params["wv"]], axis=0)               # (2, H)

    grid = (B, n_t)
    const2 = lambda b, t: (0, 0)

    out_itemsize = jnp.dtype(out_dtype).itemsize
    cost = pl.CostEstimate(
        flops=2 * B * T * C_in * H + 5 * B * T * H,
        transcendentals=0,
        bytes_accessed=(units.size * units.dtype.itemsize + fv.size * 4
                        + B * T * H * out_itemsize
                        + wu_bf16.size * 2 + wfv.size * 4 + bias_all.size * 4),
    )

    return pl.pallas_call(
        cond_embed_kernel,
        out_shape=jax.ShapeDtypeStruct((B, T, H), out_dtype),
        grid_spec=pl.GridSpec(
            grid=grid,
            in_specs=[
                pl.BlockSpec((None, tm, C_in), lambda b, t: (b, t, 0)),   # units
                pl.BlockSpec((None, tm, 2), lambda b, t: (b, t, 0)),      # [logf0|vol]
                pl.BlockSpec((None, 1, H), lambda b, t: (b, 0, 0)),       # folded bias
                pl.BlockSpec((C_in, H), const2),                          # W_unit bf16
                pl.BlockSpec((2, H), const2),                             # [wf ; wv]
            ],
            out_specs=pl.BlockSpec((None, tm, H), lambda b, t: (b, t, 0)),
        ),
        compiler_params=pltpu.CompilerParams(
            dimension_semantics=("parallel", "parallel"),
            vmem_limit_bytes=32 * 1024 * 1024,
        ),
        cost_estimate=cost,
    )(units, fv, bias_all, wu_bf16, wfv)


def make_params(key, C_in, H, n_spk):
    ks = jax.random.split(key, 7)
    scale = 0.02
    return {
        # weights stored as (in, out), i.e. transpose of PyTorch Linear.weight
        "wu": scale * jax.random.normal(ks[0], (C_in, H), jnp.float32),
        "bu": scale * jax.random.normal(ks[1], (1, H), jnp.float32),
        "wf": scale * jax.random.normal(ks[2], (1, H), jnp.float32),
        "bf": scale * jax.random.normal(ks[3], (1, H), jnp.float32),
        "wv": scale * jax.random.normal(ks[4], (1, H), jnp.float32),
        "bv": scale * jax.random.normal(ks[5], (1, H), jnp.float32),
        "spk_table": scale * jax.random.normal(ks[6], (n_spk, H), jnp.float32),
    }


def reference(units, f0, volume, spk_id, params):
    # Pure f32 reference matching the PyTorch module semantics.
    x = jnp.dot(units, params["wu"]) + params["bu"]
    x = x + jnp.log1p(f0 / 700.0) * params["wf"] + params["bf"]
    x = x + volume * params["wv"] + params["bv"]
    spk = jnp.take(params["spk_table"], spk_id.reshape(-1) - 1, axis=0)
    x = x + spk[:, None, :]
    return x


if __name__ == "__main__":
    key = jax.random.PRNGKey(0)
    # Small shapes consistent with the module: H = 256 (module default
    # n_hidden), C_in = 128 unit channels, T = 448 frames (not a multiple of
    # the 256-frame tile, so the masked trailing-block path is exercised),
    # 4 speakers.
    B, T, C_in, H, n_spk = 2, 448, 128, 256, 4
    tm = 256

    k1, k2, k3, k4, kp = jax.random.split(key, 5)
    units = jax.random.normal(k1, (B, T, C_in), jnp.float32)
    f0 = 100.0 + 400.0 * jax.random.uniform(k2, (B, T, 1), jnp.float32)
    volume = jax.random.uniform(k3, (B, T, 1), jnp.float32)
    spk_id = jax.random.randint(k4, (B, 1), 1, n_spk + 1)   # 1-based speaker id

    params = make_params(kp, C_in, H, n_spk)

    x = unit2mel_v2_cond(units, f0, volume, spk_id, params, tm=tm)
    x = jax.block_until_ready(x)

    x_ref = reference(units, f0, volume, spk_id, params)
    assert x.shape == (B, T, H), x.shape
    err = float(jnp.max(jnp.abs(x.astype(jnp.float32) - x_ref)))
    # bf16 matmul operands + bf16 output vs fp32 reference -> loose tolerance.
    assert err < 5e-2, err

    print("KERNEL_OK")
</pallas_src>

<mosaic_0001>
module attributes {stable_mosaic.version = 11 : i64} {
  func.func @cond_embed_kernel(%arg0: i32, %arg1: i32, %arg2: memref<1x256x128xf32, #tpu.memory_space<vmem>>, %arg3: memref<1x256x2xf32, #tpu.memory_space<vmem>>, %arg4: memref<1x1x256xf32, #tpu.memory_space<vmem>>, %arg5: memref<128x256xbf16, #tpu.memory_space<vmem>>, %arg6: memref<2x256xf32, #tpu.memory_space<vmem>>, %arg7: memref<1x256x256xbf16, #tpu.memory_space<vmem>>) attributes {dimension_semantics = [#tpu.dimension_semantics<parallel>, #tpu.dimension_semantics<parallel>], iteration_bounds = array<i64: 2, 2>, scalar_prefetch = 0 : i64, scratch_operands = 0 : i64, tpu.core_type = #tpu.core_type<tc>, window_params = [{transform_indices = @transform_0, window_bounds = array<i64: 1, 256, 128>}, {transform_indices = @transform_1, window_bounds = array<i64: 1, 256, 2>}, {transform_indices = @transform_2, window_bounds = array<i64: 1, 1, 256>}, {pipeline_mode = #tpu.pipeline_mode<synchronous>, transform_indices = @transform_3, window_bounds = array<i64: 128, 256>}, {pipeline_mode = #tpu.pipeline_mode<synchronous>, transform_indices = @transform_4, window_bounds = array<i64: 2, 256>}, {transform_indices = @transform_5, window_bounds = array<i64: 1, 256, 256>}]} {
    %c0 = arith.constant 0 : index
    %c0_0 = arith.constant 0 : index
    %c0_1 = arith.constant 0 : index
    %0 = vector.load %arg2[%c0, %c0_0, %c0_1] : memref<1x256x128xf32, #tpu.memory_space<vmem>>, vector<1x256x128xf32>
    %1 = vector.shape_cast %0 : vector<1x256x128xf32> to vector<256x128xf32>
    %2 = arith.truncf %1 : vector<256x128xf32> to vector<256x128xbf16>
    %c0_2 = arith.constant 0 : index
    %c0_3 = arith.constant 0 : index
    %3 = vector.load %arg5[%c0_2, %c0_3] : memref<128x256xbf16, #tpu.memory_space<vmem>>, vector<128x256xbf16>
    %cst = arith.constant dense<0.000000e+00> : vector<256x256xf32>
    %4 = tpu.matmul %2, %3, %cst {dimension_numbers = #tpu.dot_dimension_numbers<[1], [0], [0], [1], [0, 0, 1, 1], [], []>} : vector<256x128xbf16>, vector<128x256xbf16>, vector<256x256xf32> -> vector<256x256xf32>
    %c0_4 = arith.constant 0 : index
    %c0_5 = arith.constant 0 : index
    %c0_6 = arith.constant 0 : index
    %5 = vector.load %arg3[%c0_4, %c0_5, %c0_6] : memref<1x256x2xf32, #tpu.memory_space<vmem>>, vector<1x256x1xf32>
    %6 = vector.shape_cast %5 : vector<1x256x1xf32> to vector<256x1xf32>
    %c0_7 = arith.constant 0 : index
    %c0_8 = arith.constant 0 : index
    %7 = vector.load %arg6[%c0_7, %c0_8] : memref<2x256xf32, #tpu.memory_space<vmem>>, vector<1x256xf32>
    %8 = vector.broadcast %6 : vector<256x1xf32> to vector<256x256xf32>
    %9 = vector.broadcast %7 : vector<1x256xf32> to vector<256x256xf32>
    %10 = arith.mulf %8, %9 : vector<256x256xf32>
    %11 = arith.addf %4, %10 : vector<256x256xf32>
    %c0_9 = arith.constant 0 : index
    %c0_10 = arith.constant 0 : index
    %c1 = arith.constant 1 : index
    %12 = vector.load %arg3[%c0_9, %c0_10, %c1] : memref<1x256x2xf32, #tpu.memory_space<vmem>>, vector<1x256x1xf32>
    %13 = vector.shape_cast %12 : vector<1x256x1xf32> to vector<256x1xf32>
    %c1_11 = arith.constant 1 : index
    %c0_12 = arith.constant 0 : index
    %14 = vector.load %arg6[%c1_11, %c0_12] : memref<2x256xf32, #tpu.memory_space<vmem>>, vector<1x256xf32>
    %15 = vector.broadcast %13 : vector<256x1xf32> to vector<256x256xf32>
    %16 = vector.broadcast %14 : vector<1x256xf32> to vector<256x256xf32>
    %17 = arith.mulf %15, %16 : vector<256x256xf32>
    %18 = arith.addf %11, %17 : vector<256x256xf32>
    %c0_13 = arith.constant 0 : index
    %c0_14 = arith.constant 0 : index
    %c0_15 = arith.constant 0 : index
    %19 = vector.load %arg4[%c0_13, %c0_14, %c0_15] : memref<1x1x256xf32, #tpu.memory_space<vmem>>, vector<1x1x256xf32>
    %20 = vector.shape_cast %19 : vector<1x1x256xf32> to vector<1x256xf32>
    %21 = vector.broadcast %20 : vector<1x256xf32> to vector<256x256xf32>
    %22 = arith.addf %18, %21 : vector<256x256xf32>
    %23 = arith.truncf %22 : vector<256x256xf32> to vector<256x256xbf16>
    %c0_16 = arith.constant 0 : index
    %c0_17 = arith.constant 0 : index
    %c0_18 = arith.constant 0 : index
    %24 = vector.load %arg7[%c0_16, %c0_17, %c0_18] : memref<1x256x256xbf16, #tpu.memory_space<vmem>>, vector<1x256x256xbf16>
    %25 = vector.shape_cast %24 : vector<1x256x256xbf16> to vector<256x256xbf16>
    %26 = vector.shape_cast %23 : vector<256x256xbf16> to vector<1x256x256xbf16>
    tpu.vector_store %arg7[%c0_16, %c0_17, %c0_18], %26 {strides = array<i32>} : memref<1x256x256xbf16, #tpu.memory_space<vmem>>, vector<1x256x256xbf16>,
    return
  }
  func.func @transform_0(%arg0: i32, %arg1: i32) -> (i32, i32, i32) {
    %c0_i32 = arith.constant 0 : i32
    %c0_i32_0 = arith.constant 0 : i32
    return %arg0, %arg1, %c0_i32 : i32, i32, i32
  }
  func.func @transform_1(%arg0: i32, %arg1: i32) -> (i32, i32, i32) {
    %c0_i32 = arith.constant 0 : i32
    %c0_i32_0 = arith.constant 0 : i32
    return %arg0, %arg1, %c0_i32 : i32, i32, i32
  }
  func.func @transform_2(%arg0: i32, %arg1: i32) -> (i32, i32, i32) {
    %c0_i32 = arith.constant 0 : i32
    %c0_i32_0 = arith.constant 0 : i32
    %c0_i32_1 = arith.constant 0 : i32
    return %arg0, %c0_i32, %c0_i32_0 : i32, i32, i32
  }
  func.func @transform_3(%arg0: i32, %arg1: i32) -> (i32, i32) {
    %c0_i32 = arith.constant 0 : i32
    %c0_i32_0 = arith.constant 0 : i32
    %c0_i32_1 = arith.constant 0 : i32
    return %c0_i32, %c0_i32_0 : i32, i32
  }
  func.func @transform_4(%arg0: i32, %arg1: i32) -> (i32, i32) {
    %c0_i32 = arith.constant 0 : i32
    %c0_i32_0 = arith.constant 0 : i32
    %c0_i32_1 = arith.constant 0 : i32
    return %c0_i32, %c0_i32_0 : i32, i32
  }
  func.func @transform_5(%arg0: i32, %arg1: i32) -> (i32, i32, i32) {
    %c0_i32 = arith.constant 0 : i32
    %c0_i32_0 = arith.constant 0 : i32
    return %arg0, %arg1, %c0_i32 : i32, i32, i32
  }
}

</mosaic_0001>

<bundles_post_ra>
// kernel: tpu_custom_call.1
= control target key start
LH: loop header
LB: loop body
LE: loop exit
PB: predicated region body
PF: predicated region fallthrough
CT: control target
= control target key end

     0   :  { %s2820_s0 = inlined_call_operand.vmem [shape: f32[2,448,128], index: 0, kind: input, shape index: {}]   ;;  %s2821_s1 = inlined_call_operand.vmem [shape: f32[2,448,2], index: 1, kind: input, shape index: {}]   ;;  %s2822_s2 = inlined_call_operand.vmem [shape: f32[2,1,256], index: 2, kind: input, shape index: {}]   ;;  %s2823_s3 = inlined_call_operand.hbm [shape: bf16[128,256], index: 3, kind: input, shape index: {}]   ;;  %s2824_s4 = inlined_call_operand.vmem [shape: f32[2,256], index: 4, kind: input, shape index: {}]   ;;  %s2825_s5 = inlined_call_operand.hbm [shape: bf16[2,448,256], index: 5, kind: output, shape index: {}]  }
   0x1   :  { %2831 = sst [smem:[#allocation15_spill]] %s2820_s0 }
   0x2   :  { %2832 = sst [smem:[#allocation16_spill]] %s2821_s1 }
   0x3   :  { %10 = vsyncpa [#allocation3], 0 }
   0x4   :  { %11 = vsyncpa [#allocation4], 0 }
   0x5   :  { %13 = vsyncpa [#allocation4 + $0x1], 0  ;;  %s1898_s18 = smov 0   ;;  %s1900_s19 = smov 0  }
   0x6   :  { %s1902_s20 = smov 0   ;;  %s1904_s21 = smov 0  }
   0x7   :  { %s1906_s22 = smov 0   ;;  %s1908_s23 = smov 0  }
   0x8   :  { %s1910_s24 = smov 0   ;;  %s1912_s25 = smov 0  }
   0x9 LB: > { %s1501_s26 = sadd.s32 4294967295, %s1858_s25   ;;  %s1502_s27 = sadd.s32 4294967294, %s1858_s25   ;;  %s1858_s25 = sphi %s1912_s25, %s19_s25   ;;  %s1854_s24 = sphi %s1910_s24, %s2860_s24   ;;  %s1850_s23 = sphi %s1908_s23, %s2859_s23   ;;  %s1846_s22 = sphi %s1906_s22, %s2858_s22   ;;  %s1842_s21 = sphi %s1904_s21, %s2857_s21   ;;  %s1838_s20 = sphi %s1902_s20, %s2856_s20   ;;  %s1834_s19 = sphi %s1900_s19, %s2855_s19   ;;  %s1830_s18 = sphi %s1898_s18, %s2854_s18  }
   0xa   : > { %s28_s28 = sadd.s32 1, %s1850_s23  ;;  %s31_s29 = sadd.s32 1, %s1854_s24 }
   0xb   : > { %p29_p0 = scmp.ge.s32.totalorder %s28_s28, 2  ;;  %s164_s30 = sadd.s32 1, %s1838_s20 }
   0xc   : > { %p174_p1 = scmp.ne.s32.totalorder %s1838_s20, %s1834_s19  ;;  %p175_p2 = scmp.eq.s32.totalorder %s1501_s26, 3 }
   0xd   : > { %s2862_s28 = smov (%p29_p0, %s28_s28), 0  ;;  %s2864_s29 = smov (!%p29_p0, %s31_s29), %s1854_s24 }
   0xe   : > { %s160_s6 = ssub.s32 %s1850_s23, %s2862_s28  ;;  %p1950_p3 = por %p175_p2, %p174_p1 }
   0xf   : > { %p33_p4 = scmp.ge.s32.totalorder %s2864_s29, 2  ;;  %p180_p5 = scmp.ne.s32.totalorder %s1834_s19, %s1830_s18 }
  0x10   : > { %p181_p6 = scmp.eq.s32.totalorder %s1502_s27, 3  ;;  %p1503_p7 = scmp.ge.s32.totalorder %s1858_s25, 1 }
  0x11   : > { %s2866_s29 = smov (%p33_p4, %s2864_s29), 0  ;;  %p188_p9 = scmp.lt.s32.totalorder %s1858_s25, 5 }
  0x12   : > { %p1959_p8 = por %p181_p6, %p180_p5  ;;  %s159_s9 = ssub.s32 %s1854_s24, %s2866_s29 }
  0x13   : > { %s161_s10 = sor.u32 %s160_s6, %s159_s9  ;;  %p1966_p10 = pnand %p1503_p7, %p188_p9 }
  0x14   : > { %p162_p11 = scmp.eq.s32.totalorder %s161_s10, 0  ;;  %p1970_p12 = scmp.eq.s32.totalorder %s1501_s26, 0 }
  0x15   : > { %p1631_p13 = pneg %p1966_p10  ;;  %s199_s15 = sshll.u32 %s2823_s3, 4  ;;  %s200_s15 = int_to_ptr.hbm [resolvable:$true] %s199_s15 }
  0x16   : > { %s1980_s16 = scalar_select %p162_p11, %s1838_s20, %s164_s30  }
  0x17   : > { %s1860_s17 = smov [#allocation2]   ;;  %p1632_p0 = pnand %p1970_p12, %p1631_p13 }
  0x18   : > { %s201_s27 = sshll.u32 %s1860_s17, 4  ;;  %s1861_s6 = smov 128   ;;  %s202_s27 = int_to_ptr.vmem [resolvable:$true] %s201_s27 }
  0x19   : > { %s1862_s26 = smov 8   ;;  %269 = sbr.rel (%p1966_p10) target bundleno = 366 (0x16e), region = 40 }
  0x1a   : > { %1634 = dma.hbm_to_vmem [thread:$0]  (!%p1632_p0), %s200_s15, 2048, %s202_s27, [#allocation3], %s1861_s6, %s1861_s6, %s1862_s26  }
  0x1e   : > { %1821 = dma.done.wait (%p1970_p12), [#allocation3], 2048  }
  0x1f   : > { %1823 = vsyncadd (%p1970_p12), [#allocation3], 4294965248  ;;  %s1991_s30 = sshll.u32 %s1842_s21, 5  ;;  %p328_p1 = scmp.lt.s32.totalorder %s1846_s22, 1  ;;  %v1863_v0 = vmov 0  }
  0x20   : > { %1715 = vset.pattern.permute.xlu2 %v1863_v0  ;;  %1714 = vset.pattern.permute.xlu1 %v1863_v0  ;;  %p330_p2 = scmp.lt.s32.totalorder %s1991_s30, 55  ;;  %v1572_v1 = vld [vmem:[#allocation2 + $0x70] sm:$0xf]  ;;  %s2837_s1 = sld [smem:[#allocation16_spill]]  ;;  %v1605_v2 = vld [vmem:[#allocation2 + $0x74] sm:$0xf0] }
  0x21   : > { %1713 = vset.pattern.permute.xlu0 %v1863_v0  ;;  %s1996_s9 = scalar_select %p328_p1, %s1846_s22, 1  ;;  %v1604_v3 = vld [vmem:[#allocation2 + $0x74] sm:$0xf]  ;;  %v1573_v7 = vor.u32 %v1605_v2, %v1572_v1  ;;  %v1574_v8 = vld [vmem:[#allocation2 + $0x78] sm:$0xf0] }
  0x22   : > { %s331_s10 = scalar_select %p330_p2, %s1991_s30, 55  ;;  %v1564_v9 = vld [vmem:[#allocation2 + $0x60] sm:$0xf]  ;;  %v1603_v10 = vld [vmem:[#allocation2 + $0x64] sm:$0xf0]  ;;  %v1577_v11 = vor.u32 %v1604_v3, %v1574_v8 }
  0x23   : > { %s1624_s11 = smul.u32 56, %s1996_s9  ;;  %775 = vmatpush.bf16.msra.mxu0 %v1573_v7  ;;  %v1565_v12 = vor.u32 %v1603_v10, %v1564_v9  ;;  %v1602_v13 = vld [vmem:[#allocation2 + $0x64] sm:$0xf]  ;;  %v1566_v14 = vld [vmem:[#allocation2 + $0x68] sm:$0xf0]  ;;  %1608 = vmatpush.bf16.msra.mxu2 %v1573_v7  ;;  %s2838_s0 = sld [smem:[#allocation15_spill]] }
  0x24   : > { %v1556_v15 = vld [vmem:[#allocation2 + $0x50] sm:$0xf]  ;;  %864 = vmatpush.bf16.msra.mxu1 %v1577_v11  ;;  %1616 = vmatpush.bf16.msra.mxu3 %v1577_v11  ;;  %v1569_v16 = vor.u32 %v1602_v13, %v1566_v14  ;;  %v1601_v17 = vld [vmem:[#allocation2 + $0x54] sm:$0xf0]  ;;  %v1600_v18 = vld [vmem:[#allocation2 + $0x54] sm:$0xf] }
  0x25   : > { %s2000_s12 = sadd.s32 %s1624_s11, %s331_s10  ;;  %v1558_v19 = vld [vmem:[#allocation2 + $0x58] sm:$0xf0]  ;;  %v1557_v22 = vor.u32 %v1601_v17, %v1556_v15  ;;  %v1548_v24 = vld [vmem:[#allocation2 + $0x40] sm:$0xf]  ;;  %v1599_v25 = vld [vmem:[#allocation2 + $0x44] sm:$0xf0] }
  0x26   : > { %s1510_s13 = sshll.u32 %s2000_s12, 3  ;;  %v1561_v26 = vor.u32 %v1600_v18, %v1558_v19  ;;  %v1598_v27 = vld [vmem:[#allocation2 + $0x44] sm:$0xf]  ;;  %v1550_v28 = vld [vmem:[#allocation2 + $0x48] sm:$0xf0]  ;;  %v1549_v29 = vor.u32 %v1599_v25, %v1548_v24  ;;  %s320_s10 = sand.u32 1, %s1834_s19  }
  0x27   : > { %s2008_s17 = scalar_lea.vmem %s2837_s1, %s1510_s13  ;;  %776 = vmatpush.bf16.msra.mxu0 %v1565_v12  ;;  %1609 = vmatpush.bf16.msra.mxu2 %v1565_v12  ;;  %v1540_v30 = vld [vmem:[#allocation2 + $0x30] sm:$0xf]  ;;  %v1597_v31 = vld [vmem:[#allocation2 + $0x34] sm:$0xf0]  ;;  %v1553_v32 = vor.u32 %v1598_v27, %v1550_v28  ;;  %v1596_v33 = vld [vmem:[#allocation2 + $0x34] sm:$0xf] }
  0x28   : > { %v2011_v4 = vld [vmem:[%s2008_s17 + $0x20] sm:$0xff]  ;;  %v2014_v5 = vld [vmem:[%s2008_s17 + $0x10] sm:$0xff]  ;;  %v2023_v20 = vld [vmem:[%s2008_s17 + $0x28] sm:$0xff]  ;;  %865 = vmatpush.bf16.msra.mxu1 %v1569_v16  ;;  %1617 = vmatpush.bf16.msra.mxu3 %v1569_v16  ;;  %v1541_v37 = vor.u32 %v1597_v31, %v1540_v30  ;;  %s2747_s11 = scalar_lea.sflag [#allocation4], %s320_s10  ;;  %s1359_s12 = ssub.s32 (%p1950_p3), 56, %s1991_s30 }
  0x29   : > { %v2017_v6 = vld [vmem:[%s2008_s17] sm:$0xff]  ;;  %488 = vperm.xlu2 %1715, %v2011_v4   ;;  %478 = vperm.xlu1 %1714, %v2014_v5   ;;  %v2026_v21 = vld [vmem:[%s2008_s17 + $0x18] sm:$0xff]  ;;  %v2029_v23 = vld [vmem:[%s2008_s17 + $0x8] sm:$0xff]  ;;  %s2060_s26 = scalar_lea.vmem %s2838_s0, %s1510_s13  ;;  %s1513_s13 = sshll.u32 %s1996_s9, 1 }
  0x2a   : > { %468 = vperm.xlu0 %1713, %v2017_v6   ;;  %v1542_v34 = vld [vmem:[#allocation2 + $0x38] sm:$0xf0]  ;;  %v2035_v35 = vld [vmem:[%s2008_s17 + $0x40] sm:$0xff]  ;;  %v2041_v38 = vld [vmem:[%s2008_s17 + $0x30] sm:$0xff]  ;;  %s1508_s9 = sshll.u32 %s320_s10, 8  ;;  %p1360_p4 = scmp.lt.s32.totalorder (%p1950_p3), %s1359_s12, 32 }
  0x2b   : > { %777 = vmatpush.bf16.msra.mxu0 %v1557_v22  ;;  %1610 = vmatpush.bf16.msra.mxu2 %v1557_v22  ;;  %v2038_v36 = vld [vmem:[%s2008_s17 + $0x38] sm:$0xff]  ;;  %v1532_v39 = vld [vmem:[#allocation2 + $0x20] sm:$0xf]  ;;  %v1595_v40 = vld [vmem:[#allocation2 + $0x24] sm:$0xf0]  ;;  %v1545_v41 = vor.u32 %v1596_v33, %v1542_v34 }
  0x2c   : > { %866 = vmatpush.bf16.msra.mxu1 %v1561_v26  ;;  %1618 = vmatpush.bf16.msra.mxu3 %v1561_v26  ;;  %v1594_v42 = vld [vmem:[#allocation2 + $0x24] sm:$0xf]  ;;  %v1534_v43 = vld [vmem:[#allocation2 + $0x28] sm:$0xf0]  ;;  %v1533_v44 = vor.u32 %v1595_v40, %v1532_v39  ;;  %v1524_v45 = vld [vmem:[#allocation2 + $0x10] sm:$0xf] }
  0x2d   : > { %v1593_v46 = vld [vmem:[#allocation2 + $0x14] sm:$0xf0]  ;;  %v1537_v47 = vor.u32 %v1594_v42, %v1534_v43  ;;  %v1592_v48 = vld [vmem:[#allocation2 + $0x14] sm:$0xf]  ;;  %v1526_v49 = vld [vmem:[#allocation2 + $0x18] sm:$0xf0] }
  0x2e   : > { %v2047_v50 = vld [vmem:[%s2008_s17 + $0x58] sm:$0xff]  ;;  %v2050_v51 = vld [vmem:[%s2008_s17 + $0x50] sm:$0xff]  ;;  %v1525_v52 = vor.u32 %v1593_v46, %v1524_v45  ;;  %v2053_v53 = vld [vmem:[%s2008_s17 + $0x48] sm:$0xff]  ;;  %v1529_v56 = vor.u32 %v1592_v48, %v1526_v49  ;;  %v1864_v49 = vmov 1  }
  0x2f   : > { %778 = vmatpush.bf16.msra.mxu0 %v1549_v29  ;;  %1611 = vmatpush.bf16.msra.mxu2 %v1549_v29  ;;  %v1516_v54 = vld [vmem:[#allocation2] sm:$0xf]  ;;  %v1591_v55 = vld [vmem:[#allocation2 + $0x4] sm:$0xf0]  ;;  %v1590_v57 = vld [vmem:[#allocation2 + $0x4] sm:$0xf] }
  0x30   : > { %867 = vmatpush.bf16.msra.mxu1 %v1553_v32  ;;  %1619 = vmatpush.bf16.msra.mxu3 %v1553_v32  ;;  %v1518_v58 = vld [vmem:[#allocation2 + $0x8] sm:$0xf0]  ;;  %v1517_v59 = vor.u32 %v1591_v55, %v1516_v54  ;;  %v369_v60 = vld [vmem:[%s2060_s26] sm:$0xff]  ;;  %v2070_v3 = vld [vmem:[%s2008_s17 + $0x70] sm:$0xff] }
  0x31   : > { %493 = vperm.xlu2 %1715, %v2023_v20   ;;  %483 = vperm.xlu1 %1714, %v2026_v21   ;;  %v370_v61 = vld [vmem:[%s2060_s26 + $0x8] sm:$0xff]  ;;  %v385_v62 = vld [vmem:[%s2060_s26 + $0x80] sm:$0xff]  ;;  %v1521_v0 = vor.u32 %v1590_v57, %v1518_v58  ;;  %v2089_v11 = vld [vmem:[%s2008_s17 + $0x78] sm:$0xff] }
  0x32   : > { %473 = vperm.xlu0 %1713, %v2029_v23   ;;  %v386_v63 = vld [vmem:[%s2060_s26 + $0x88] sm:$0xff]  ;;  %v401_v1 = vpack.c.bf16 %v370_v61, %v369_v60  ;;  %v2077_v8 = vld [vmem:[%s2008_s17 + $0x60] sm:$0xff]  ;;  %v371_v12 = vld [vmem:[%s2060_s26 + $0x10] sm:$0xff] }
  0x33   : > { %779 = vmatpush.bf16.msra.mxu0 %v1541_v37  ;;  %1612 = vmatpush.bf16.msra.mxu2 %v1541_v37  ;;  %v409_v2 = vpack.c.bf16 %v386_v63, %v385_v62  ;;  %v2073_v7 = vld [vmem:[%s2008_s17 + $0x68] sm:$0xff]  ;;  %v2085_v10 = vld [vmem:[%s2008_s17 + $0x80] sm:$0xff]  ;;  %v372_v13 = vld [vmem:[%s2060_s26 + $0x18] sm:$0xff] }
  0x34   : > { %868 = vmatpush.bf16.msra.mxu1 %v1545_v41  ;;  %1620 = vmatpush.bf16.msra.mxu3 %v1545_v41  ;;  %v2082_v9 = vld [vmem:[%s2008_s17 + $0x88] sm:$0xff]  ;;  %v387_v14 = vld [vmem:[%s2060_s26 + $0x90] sm:$0xff]  ;;  %v388_v15 = vld [vmem:[%s2060_s26 + $0x98] sm:$0xff]  ;;  %v402_v16 = vpack.c.bf16 %v372_v13, %v371_v12 }
  0x35   : > { %v410_v17 = vpack.c.bf16 %v388_v15, %v387_v14  ;;  %v2098_v18 = vld [vmem:[%s2008_s17 + $0xa0] sm:$0xff]  ;;  %v2101_v19 = vld [vmem:[%s2008_s17 + $0x98] sm:$0xff]  ;;  %v2106_v22 = vld [vmem:[%s2008_s17 + $0x90] sm:$0xff] }
  0x36   : > { %v2111_v24 = vld [vmem:[%s2008_s17 + $0xb8] sm:$0xff]  ;;  %v2114_v25 = vld [vmem:[%s2008_s17 + $0xb0] sm:$0xff]  ;;  %v2118_v26 = vld [vmem:[%s2008_s17 + $0xa8] sm:$0xff] }
  0x37   : > { %780 = vmatpush.bf16.msra.mxu0 %v1533_v44  ;;  %1613 = vmatpush.bf16.msra.mxu2 %v1533_v44  ;;  %v373_v27 = vld [vmem:[%s2060_s26 + $0x20] sm:$0xff]  ;;  %v374_v28 = vld [vmem:[%s2060_s26 + $0x28] sm:$0xff]  ;;  %v2127_v33 = vld [vmem:[%s2008_s17 + $0xd0] sm:$0xff] }
  0x38   : > { %869 = vmatpush.bf16.msra.mxu1 %v1537_v47  ;;  %1621 = vmatpush.bf16.msra.mxu3 %v1537_v47  ;;  %v389_v29 = vld [vmem:[%s2060_s26 + $0xa0] sm:$0xff]  ;;  %v390_v30 = vld [vmem:[%s2060_s26 + $0xa8] sm:$0xff]  ;;  %v403_v31 = vpack.c.bf16 %v374_v28, %v373_v27  ;;  %v2146_v41 = vld [vmem:[%s2008_s17 + $0xd8] sm:$0xff] }
  0x39   : > { %508 = vperm.xlu2 %1715, %v2035_v35   ;;  %503 = vperm.xlu1 %1714, %v2038_v36   ;;  %v411_v32 = vpack.c.bf16 %v390_v30, %v389_v29  ;;  %v2130_v34 = vld [vmem:[%s2008_s17 + $0xc8] sm:$0xff]  ;;  %v2134_v37 = vld [vmem:[%s2008_s17 + $0xc0] sm:$0xff]  ;;  %v375_v42 = vld [vmem:[%s2060_s26 + $0x30] sm:$0xff] }
  0x3a   : > { %498 = vperm.xlu0 %1713, %v2041_v38   ;;  %v2139_v39 = vld [vmem:[%s2008_s17 + $0xe8] sm:$0xff]  ;;  %v2142_v40 = vld [vmem:[%s2008_s17 + $0xe0] sm:$0xff]  ;;  %v376_v43 = vld [vmem:[%s2060_s26 + $0x38] sm:$0xff] }
  0x3b   : > { %781 = vmatpush.bf16.msra.mxu0 %v1525_v52  ;;  %1614 = vmatpush.bf16.msra.mxu2 %v1525_v52  ;;  %v391_v44 = vld [vmem:[%s2060_s26 + $0xb0] sm:$0xff]  ;;  %v392_v45 = vld [vmem:[%s2060_s26 + $0xb8] sm:$0xff]  ;;  %v404_v46 = vpack.c.bf16 %v376_v43, %v375_v42  ;;  %v377_v54 = vld [vmem:[%s2060_s26 + $0x40] sm:$0xff] }
  0x3c   : > { %870 = vmatpush.bf16.msra.mxu1 %v1529_v56  ;;  %1622 = vmatpush.bf16.msra.mxu3 %v1529_v56  ;;  %v412_v47 = vpack.c.bf16 %v392_v45, %v391_v44  ;;  %v2155_v48 = vld [vmem:[%s2008_s17 + $0xf8] sm:$0xff]  ;;  %v2158_v52 = vld [vmem:[%s2008_s17 + $0xf0] sm:$0xff]  ;;  %v378_v55 = vld [vmem:[%s2060_s26 + $0x48] sm:$0xff]  ;;  %s362_s17 = scalar_lea.vmem %s2822_s2, %s1513_s13 }
  0x3d   : > { %v393_v57 = vld [vmem:[%s2060_s26 + $0xc0] sm:$0xff]  ;;  %v394_v58 = vld [vmem:[%s2060_s26 + $0xc8] sm:$0xff]  ;;  %v379_v60 = vld [vmem:[%s2060_s26 + $0x50] sm:$0xff] }
  0x3e   : > { %v380_v61 = vld [vmem:[%s2060_s26 + $0x58] sm:$0xff]  ;;  %v395_v62 = vld [vmem:[%s2060_s26 + $0xd0] sm:$0xff]  ;;  %v398_v12 = vld [vmem:[%s2060_s26 + $0xe8] sm:$0xff] }
  0x3f   : > { %782 = vmatpush.bf16.msra.mxu0 %v1517_v59  ;;  %1615 = vmatpush.bf16.msra.mxu2 %v1517_v59  ;;  %v405_v59 = vpack.c.bf16 %v378_v55, %v377_v54  ;;  %v406_v63 = vpack.c.bf16 %v380_v61, %v379_v60  ;;  %v400_v27 = vld [vmem:[%s2060_s26 + $0xf8] sm:$0xff] }
  0x40   : > { %871 = vmatpush.bf16.msra.mxu1 %v1521_v0  ;;  %1623 = vmatpush.bf16.msra.mxu3 %v1521_v0 }
  0x41   : > { %523 = vperm.xlu2 %1715, %v2047_v50   ;;  %518 = vperm.xlu1 %1714, %v2050_v51  }
  0x42   : > { %513 = vperm.xlu0 %1713, %v2053_v53   ;;  %783 = vmatmul.bf16.vlgmr.msra.gmra.mxu0 %v401_v1 }
  0x43   : > { %823 = vmatmul.bf16.vlgmr.msra.gmra.mxu2 %v409_v2  ;;  %872 = vmatmul.bf16.vlgmr.msra.gmra.mxu1 %v401_v1 }
  0x44   : > { %912 = vmatmul.bf16.vlgmr.msra.gmra.mxu3 %v409_v2  ;;  %v397_v2 = vld [vmem:[%s2060_s26 + $0xe0] sm:$0xff] }
  0x49   : > { %538 = vperm.xlu2 %1715, %v2070_v3   ;;  %533 = vperm.xlu1 %1714, %v2073_v7  }
  0x4a   : > { %528 = vperm.xlu0 %1713, %v2077_v8  }
  0x51   : > { %553 = vperm.xlu2 %1715, %v2082_v9   ;;  %548 = vperm.xlu1 %1714, %v2085_v10  }
  0x52   : > { %543 = vperm.xlu0 %1713, %v2089_v11   ;;  %788 = vmatmul.bf16.gmra.mxu0 %v402_v16 }
  0x53   : > { %828 = vmatmul.bf16.gmra.mxu2 %v410_v17  ;;  %877 = vmatmul.bf16.gmra.mxu1 %v402_v16 }
  0x54   : > { %917 = vmatmul.bf16.gmra.mxu3 %v410_v17  ;;  %v399_v17 = vld [vmem:[%s2060_s26 + $0xf0] sm:$0xff] }
  0x59   : > { %568 = vperm.xlu2 %1715, %v2098_v18   ;;  %563 = vperm.xlu1 %1714, %v2101_v19  }
  0x5a   : > { %558 = vperm.xlu0 %1713, %v2106_v22  }
  0x61   : > { %583 = vperm.xlu2 %1715, %v2111_v24   ;;  %578 = vperm.xlu1 %1714, %v2114_v25  }
  0x62   : > { %573 = vperm.xlu0 %1713, %v2118_v26   ;;  %793 = vmatmul.bf16.gmra.mxu0 %v403_v31 }
  0x63   : > { %833 = vmatmul.bf16.gmra.mxu2 %v411_v32  ;;  %882 = vmatmul.bf16.gmra.mxu1 %v403_v31 }
  0x64   : > { %922 = vmatmul.bf16.gmra.mxu3 %v411_v32 }
  0x69   : > { %598 = vperm.xlu2 %1715, %v2127_v33   ;;  %593 = vperm.xlu1 %1714, %v2130_v34  }
  0x6a   : > { %588 = vperm.xlu0 %1713, %v2134_v37  }
  0x71   : > { %613 = vperm.xlu2 %1715, %v2139_v39   ;;  %608 = vperm.xlu1 %1714, %v2142_v40  }
  0x72   : > { %603 = vperm.xlu0 %1713, %v2146_v41   ;;  %798 = vmatmul.bf16.gmra.mxu0 %v404_v46 }
  0x73   : > { %838 = vmatmul.bf16.gmra.mxu2 %v412_v47  ;;  %887 = vmatmul.bf16.gmra.mxu1 %v404_v46 }
  0x74   : > { %927 = vmatmul.bf16.gmra.mxu3 %v412_v47 }
  0x79   : > { %1716 = vset.pattern.permute.xlu2 %v1864_v49  ;;  %623 = vperm.xlu1 %1714, %v2155_v48  }
  0x7a   : > { %618 = vperm.xlu0 %1713, %v2158_v52   ;;  %956 = vperm.xlu2 %1716, %v2017_v6   ;;  %v413_v6 = vpack.c.bf16 %v394_v58, %v393_v57 }
  0x81   : > { %1718 = vset.pattern.permute.xlu1 %v1864_v49 }
  0x82   : > { %964 = vperm.xlu1 %1718, %v2014_v5   ;;  %1717 = vset.pattern.permute.xlu0 %v1864_v49 }
  0x83   : > { %v2166_v56 = vpop.permute.xlu2 %488  ;;  %968 = vperm.xlu2 %1716, %v2026_v21   ;;  %960 = vperm.xlu0 %1717, %v2029_v23   ;;  %v396_v23 = vld [vmem:[%s2060_s26 + $0xd8] sm:$0xff] }
  0x84   : > { %803 = vmatmul.bf16.gmra.mxu0 %v405_v59  ;;  %843 = vmatmul.bf16.gmra.mxu2 %v413_v6 }
  0x85   : > { %892 = vmatmul.bf16.gmra.mxu1 %v405_v59  ;;  %932 = vmatmul.bf16.gmra.mxu3 %v413_v6 }
  0x8a   : > { %972 = vperm.xlu1 %1718, %v2011_v4   ;;  %v414_v4 = vpack.c.bf16 %v396_v23, %v395_v62 }
  0x8b   : > { %v2172_v5 = vpop.permute.xlu2 %493  ;;  %976 = vperm.xlu2 %1716, %v2023_v20   ;;  %980 = vperm.xlu0 %1717, %v2041_v38  }
  0x92   : > { %984 = vperm.xlu1 %1718, %v2038_v36  }
  0x93   : > { %v2179_v21 = vpop.permute.xlu2 %508  ;;  %988 = vperm.xlu2 %1716, %v2035_v35   ;;  %992 = vperm.xlu0 %1717, %v2053_v53   ;;  %v381_v35 = vld [vmem:[%s2060_s26 + $0x60] sm:$0xff]  ;;  %v382_v53 = vld [vmem:[%s2060_s26 + $0x68] sm:$0xff] }
  0x94   : > { %808 = vmatmul.bf16.gmra.mxu0 %v406_v63  ;;  %848 = vmatmul.bf16.gmra.mxu2 %v414_v4 }
  0x95   : > { %897 = vmatmul.bf16.gmra.mxu1 %v406_v63  ;;  %937 = vmatmul.bf16.gmra.mxu3 %v414_v4 }
  0x9a   : > { %996 = vperm.xlu1 %1718, %v2050_v51  }
  0x9b   : > { %v2186_v20 = vpop.permute.xlu2 %523  ;;  %v2188_v38 = vpop.permute.xlu1 %478  ;;  %1000 = vperm.xlu2 %1716, %v2047_v50   ;;  %1004 = vperm.xlu0 %1717, %v2077_v8   ;;  %v407_v50 = vpack.c.bf16 %v382_v53, %v381_v35  ;;  %v415_v8 = vpack.c.bf16 %v398_v12, %v397_v2 }
  0x9c   : > { %v2192_v36 = vpop.permute.xlu0 %468 }
  0xa2   : > { %1008 = vperm.xlu1 %1718, %v2073_v7   ;;  %v383_v7 = vld [vmem:[%s2060_s26 + $0x70] sm:$0xff] }
  0xa3   : > { %v2197_v0 = vpop.permute.xlu2 %538  ;;  %v2199_v1 = vpop.permute.xlu1 %483  ;;  %1012 = vperm.xlu2 %1716, %v2070_v3   ;;  %1016 = vperm.xlu0 %1717, %v2089_v11   ;;  %v384_v11 = vld [vmem:[%s2060_s26 + $0x78] sm:$0xff]  ;;  %s2322_s26 = scalar_lea.vmem [#allocation5], %s1508_s9 }
  0xa4   : > { %v2205_v51 = vpop.permute.xlu0 %473  ;;  %813 = vmatmul.bf16.gmra.mxu0 %v407_v50  ;;  %853 = vmatmul.bf16.gmra.mxu2 %v415_v8 }
  0xa5   : > { %902 = vmatmul.bf16.gmra.mxu1 %v407_v50  ;;  %942 = vmatmul.bf16.gmra.mxu3 %v415_v8 }
  0xaa   : > { %1020 = vperm.xlu1 %1718, %v2085_v10   ;;  %v416_v10 = vpack.c.bf16 %v400_v27, %v399_v17 }
  0xab   : > { %v2208_v13 = vpop.permute.xlu2 %553  ;;  %v2210_v14 = vpop.permute.xlu1 %503  ;;  %1024 = vperm.xlu2 %1716, %v2082_v9   ;;  %1028 = vperm.xlu0 %1717, %v2106_v22   ;;  %v408_v9 = vpack.c.bf16 %v384_v11, %v383_v7 }
  0xac   : > { %v2214_v3 = vpop.permute.xlu0 %498 }
  0xb2   : > { %1032 = vperm.xlu1 %1718, %v2101_v19  }
  0xb3   : > { %v2219_v15 = vpop.permute.xlu2 %568  ;;  %v2221_v16 = vpop.permute.xlu1 %518  ;;  %1036 = vperm.xlu2 %1716, %v2098_v18   ;;  %1040 = vperm.xlu0 %1717, %v2118_v26  }
  0xb4   : > { %v2227_v28 = vpop.permute.xlu0 %513  ;;  %818 = vmatmul.bf16.gmra.mxu0 %v408_v9  ;;  %858 = vmatmul.bf16.gmra.mxu2 %v416_v10 }
  0xb5   : > { %907 = vmatmul.bf16.gmra.mxu1 %v408_v9  ;;  %947 = vmatmul.bf16.gmra.mxu3 %v416_v10 }
  0xba   : > { %1044 = vperm.xlu1 %1718, %v2114_v25  }
  0xbb   : > { %v2230_v22 = vpop.permute.xlu2 %583  ;;  %1048 = vperm.xlu2 %1716, %v2111_v24   ;;  %v2234_v29 = vpop.permute.xlu1 %533  ;;  %1052 = vperm.xlu0 %1717, %v2134_v37   ;;  %v465_v24 = vld [vmem:[%s2824_s4] ss:$2 sm:$0x3] }
  0xbc   : > { %v2237_v18 = vpop.permute.xlu0 %528  ;;  %v2249_v32 = vperm.slane %v465_v24, 0  ;;  %v2251_v37 = vperm.slane %v465_v24, 1 }
  0xbe   : > { %v631_v59 = vmul.f32 %v2249_v32, %v2192_v36  ;;  %v632_v6 = vmul.f32 %v2251_v37, %v2192_v36  ;;  %v637_v10 = vmul.f32 %v2249_v32, %v2199_v1 }
  0xbf   : > { %v784_v25 = vpop.f32.mrf.mxu0 }
  0xc0   : > { %v873_v31 = vpop.f32.mrf.mxu1  ;;  %v785_v4 = vadd.f32 %v784_v25, %v631_v59 }
  0xc1   : > { %v874_v35 = vadd.f32 %v873_v31, %v632_v6 }
  0xc2   : > { %1056 = vperm.xlu1 %1718, %v2130_v34  }
  0xc3   : > { %v2239_v19 = vpop.permute.xlu2 %598  ;;  %1060 = vperm.xlu2 %1716, %v2127_v33   ;;  %v549_v26 = vpop.permute.xlu1 %548  ;;  %1064 = vperm.xlu0 %1717, %v2146_v41  }
  0xc4   : > { %v2244_v30 = vpop.permute.xlu0 %543  ;;  %v663_v34 = vmul.f32 %v2249_v32, %v549_v26  ;;  %v664_v41 = vmul.f32 %v2251_v37, %v549_v26 }
  0xc6   : > { %v824_v43 = vpop.f32.mrf.mxu2 }
  0xc7   : > { %v2263_v45 = vadd.f32 %v824_v43, %v663_v34  ;;  %v913_v46 = vpop.f32.mrf.mxu3  ;;  %v2267_v49 = vpop.f32.mrf.mxu0  ;;  %v638_v34 = vmul.f32 %v2251_v37, %v2199_v1 }
  0xc8   : > { %v2265_v47 = vadd.f32 %v913_v46, %v664_v41 }
  0xca   : > { %1068 = vperm.xlu1 %1718, %v2142_v40   ;;  %v2269_v40 = vpop.f32.mrf.mxu1 }
  0xcb   : > { %1072 = vperm.xlu2 %1716, %v2139_v39   ;;  %v2256_v33 = vpop.permute.xlu1 %563  ;;  %1076 = vperm.xlu0 %1717, %v2158_v52   ;;  %v2260_v42 = vpop.permute.xlu2 %613  ;;  %v1578_v39 = vld [vmem:[%s2824_s4 + $0x1] ss:$2 sm:$0x3] }
  0xcc   : > { %v559_v44 = vpop.permute.xlu0 %558  ;;  %v1216_v52 = vld [vmem:[%s362_s17] sm:$0x3]  ;;  %v2280_v55 = vperm.slane %v1578_v39, 0  ;;  %v2282_v57 = vperm.slane %v1578_v39, 1  ;;  %v669_v1 = vmul.f32 %v2249_v32, %v2256_v33 }
  0xcd   : > { %v2296_v62 = vperm.slane %v1216_v52, 1  ;;  %v667_v8 = vmul.f32 %v2249_v32, %v559_v44  ;;  %v668_v27 = vmul.f32 %v2251_v37, %v559_v44 }
  0xce   : > { %v2284_v58 = vpop.f32.mrf.mxu2 }
  0xcf   : > { %v2292_v61 = vpop.f32.mrf.mxu3  ;;  %v2298_v63 = vpop.f32.mrf.mxu0 }
  0xd2   : > { %1080 = vperm.xlu1 %1718, %v2155_v48   ;;  %v2294_v48 = vperm.slane %v1216_v52, 0  ;;  %v2302_v12 = vpop.f32.mrf.mxu1 }
  0xd3   : > { %v2278_v54 = vpop.permute.xlu1 %578 }
  0xd4   : > { %v2290_v60 = vpop.permute.xlu0 %573  ;;  %v957_v23 = vpop.permute.xlu2 %956 }
  0xd5   : > { %v1088_v53 = vmul.f32 %v2280_v55, %v957_v23  ;;  %v1089_v2 = vmul.f32 %v2282_v57, %v957_v23 }
  0xd6   : > { %v829_v9 = vpop.f32.mrf.mxu2 }
  0xd7   : > { %v1152_v36 = vadd.f32 %v1088_v53, %v785_v4  ;;  %v1153_v50 = vadd.f32 %v1089_v2, %v874_v35  ;;  %v2316_v24 = vadd.f32 %v829_v9, %v667_v8  ;;  %v918_v31 = vpop.f32.mrf.mxu3  ;;  %v791_v46 = vpop.f32.mrf.mxu0  ;;  %v670_v2 = vmul.f32 %v2251_v37, %v2256_v33 }
  0xd8   : > { %v2320_v41 = vadd.f32 %v918_v31, %v668_v27  ;;  %v792_v52 = vadd.f32 %v791_v46, %v637_v10  ;;  %v641_v33 = vmul.f32 %v2249_v32, %v2172_v5 }
  0xd9   : > { %v1222_v7 = vadd.f32 %v2294_v48, %v1152_v36  ;;  %v1223_v11 = vadd.f32 %v2296_v62, %v1153_v50 }
  0xda   : > { %v880_v59 = vpop.f32.mrf.mxu1 }
  0xdb   : > { %v2309_v17 = vpop.permute.xlu1 %593  ;;  %v1286_v26 = vpack.c.bf16 %v1223_v11, %v1222_v7  ;;  %v881_v6 = vadd.f32 %v880_v59, %v638_v34 }
  0xdc   : > { %v2314_v25 = vpop.permute.xlu0 %588 }
  0xdd   : > { %v969_v43 = vpop.permute.xlu2 %968  ;;  %1318 = vst [vmem:[%s2322_s26] sm:$0xff] %v1286_v26 }
  0xde   : > { %v1094_v44 = vmul.f32 %v2280_v55, %v969_v43  ;;  %v1095_v39 = vmul.f32 %v2282_v57, %v969_v43  ;;  %v831_v50 = vpop.f32.mrf.mxu2 }
  0xdf   : > { %v2337_v7 = vadd.f32 %v831_v50, %v669_v1  ;;  %v920_v11 = vpop.f32.mrf.mxu3  ;;  %v794_v26 = vpop.f32.mrf.mxu0  ;;  %v635_v50 = vmul.f32 %v2249_v32, %v2188_v38 }
  0xe0   : > { %v1158_v23 = vadd.f32 %v1094_v44, %v792_v52  ;;  %v1159_v4 = vadd.f32 %v1095_v39, %v881_v6  ;;  %v2339_v9 = vadd.f32 %v920_v11, %v670_v2  ;;  %v642_v52 = vmul.f32 %v2251_v37, %v2172_v5 }
  0xe1   : > { %v636_v11 = vmul.f32 %v2251_v37, %v2188_v38  ;;  %v633_v38 = vmul.f32 %v2249_v32, %v2205_v51 }
  0xe2   : > { %v1228_v35 = vadd.f32 %v2294_v48, %v1158_v23  ;;  %v1229_v36 = vadd.f32 %v2296_v62, %v1159_v4  ;;  %v883_v31 = vpop.f32.mrf.mxu1 }
  0xe3   : > { %v2330_v53 = vpop.permute.xlu1 %608 }
  0xe4   : > { %2839 = vst [vmem:[#allocation8_spill] sm:$0xff] %v2330_v53  ;;  %v2335_v8 = vpop.permute.xlu0 %603  ;;  %v1289_v27 = vpack.c.bf16 %v1229_v36, %v1228_v35 }
  0xe5   : > { %2840 = vst [vmem:[#allocation9_spill] sm:$0xff] %v2335_v8  ;;  %v977_v10 = vpop.permute.xlu2 %976 }
  0xe6   : > { %1321 = vst [vmem:[%s2322_s26 + $0x18] sm:$0xff] %v1289_v27  ;;  %v2344_v43 = vpop.f32.mrf.mxu2  ;;  %v1098_v46 = vmul.f32 %v2280_v55, %v977_v10  ;;  %v1099_v59 = vmul.f32 %v2282_v57, %v977_v10 }
  0xe7   : > { %v2351_v39 = vpop.f32.mrf.mxu3  ;;  %v796_v23 = vpop.f32.mrf.mxu0 }
  0xe8   : > { %v797_v4 = vadd.f32 %v796_v23, %v641_v33  ;;  %v879_v33 = vadd.f32 %v2302_v12, %v636_v11  ;;  %v634_v23 = vmul.f32 %v2251_v37, %v2205_v51 }
  0xea   : > { %v885_v1 = vpop.f32.mrf.mxu1  ;;  %v1162_v2 = vadd.f32 %v1098_v46, %v797_v4  ;;  %v876_v11 = vadd.f32 %v2269_v40, %v634_v23  ;;  %v644_v23 = vmul.f32 %v2251_v37, %v2214_v3 }
  0xeb   : > { %v2342_v34 = vpop.permute.xlu1 %623  ;;  %v886_v35 = vadd.f32 %v885_v1, %v642_v52 }
  0xec   : > { %2841 = vst [vmem:[#allocation10_spill] sm:$0xff] %v2342_v34  ;;  %v2349_v44 = vpop.permute.xlu0 %618  ;;  %v1232_v27 = vadd.f32 %v2294_v48, %v1162_v2 }
  0xed   : > { %2842 = vst [vmem:[#allocation11_spill] sm:$0xff] %v2349_v44  ;;  %v2356_v6 = vpop.permute.xlu2 %988  ;;  %v1163_v36 = vadd.f32 %v1099_v59, %v886_v35  ;;  %v790_v44 = vadd.f32 %v2298_v63, %v635_v50  ;;  %v787_v50 = vadd.f32 %v2267_v49, %v633_v38  ;;  %v640_v49 = vmul.f32 %v2251_v37, %v2166_v56 }
  0xee   : > { %v2364_v34 = vpop.f32.mrf.mxu2  ;;  %v643_v38 = vmul.f32 %v2249_v32, %v2214_v3 }
  0xef   : > { %v1233_v5 = vadd.f32 %v2296_v62, %v1163_v36  ;;  %v2368_v46 = vpop.f32.mrf.mxu3  ;;  %v799_v36 = vpop.f32.mrf.mxu0 }
  0xf1   : > { %v1291_v4 = vpack.c.bf16 %v1233_v5, %v1232_v27 }
  0xf2   : > { %v888_v12 = vpop.f32.mrf.mxu1 }
  0xf3   : > { %1323 = vst [vmem:[%s2322_s26 + $0x28] sm:$0xff] %v1291_v4 }
  0xf4   : > { %v965_v10 = vpop.permute.xlu1 %964 }
  0xf5   : > { %v1092_v52 = vmul.f32 %v2280_v55, %v965_v10  ;;  %v1093_v59 = vmul.f32 %v2282_v57, %v965_v10  ;;  %v2376_v1 = vpop.permute.xlu2 %1000  ;;  %v961_v35 = vpop.permute.xlu0 %960 }
  0xf6   : > { %v1090_v10 = vmul.f32 %v2280_v55, %v961_v35  ;;  %v1091_v8 = vmul.f32 %v2282_v57, %v961_v35 }
  0xf7   : > { %v1156_v63 = vadd.f32 %v1092_v52, %v790_v44  ;;  %v1157_v2 = vadd.f32 %v1093_v59, %v879_v33  ;;  %v639_v44 = vmul.f32 %v2249_v32, %v2166_v56  ;;  %v2391_v59 = vpop.f32.mrf.mxu2  ;;  %v2398_v4 = vpop.f32.mrf.mxu3 }
  0xf8   : > { %v1154_v5 = vadd.f32 %v1090_v10, %v787_v50  ;;  %v1155_v53 = vadd.f32 %v1091_v8, %v876_v11  ;;  %2843 = vst [vmem:[#allocation12_spill] sm:$0xff] %v2398_v4  ;;  %v800_v10 = vadd.f32 %v799_v36, %v643_v38  ;;  %v665_v36 = vmul.f32 %v2249_v32, %v2208_v13 }
  0xf9   : > { %v1226_v51 = vadd.f32 %v2294_v48, %v1156_v63  ;;  %v1227_v27 = vadd.f32 %v2296_v62, %v1157_v2  ;;  %v795_v8 = vadd.f32 %v794_v26, %v639_v44  ;;  %v884_v63 = vadd.f32 %v883_v31, %v640_v49  ;;  %v801_v26 = vpop.f32.mrf.mxu0 }
  0xfa   : > { %v1224_v40 = vadd.f32 %v2294_v48, %v1154_v5  ;;  %v1225_v52 = vadd.f32 %v2296_v62, %v1155_v53  ;;  %v890_v5 = vpop.f32.mrf.mxu1 }
  0xfb   : > { %v1288_v33 = vpack.c.bf16 %v1227_v27, %v1226_v51  ;;  %v889_v51 = vadd.f32 %v888_v12, %v644_v23  ;;  %v666_v12 = vmul.f32 %v2251_v37, %v2208_v13  ;;  %v648_v13 = vmul.f32 %v2251_v37, %v2179_v21 }
  0xfc   : > { %v973_v35 = vpop.permute.xlu1 %972  ;;  %v1287_v56 = vpack.c.bf16 %v1225_v52, %v1224_v40 }
  0xfd   : > { %1320 = vst [vmem:[%s2322_s26 + $0x10] sm:$0xff] %v1288_v33  ;;  %v1096_v2 = vmul.f32 %v2280_v55, %v973_v35  ;;  %v1097_v53 = vmul.f32 %v2282_v57, %v973_v35  ;;  %v2402_v50 = vpop.permute.xlu2 %1012  ;;  %v981_v11 = vpop.permute.xlu0 %980  ;;  %v645_v35 = vmul.f32 %v2249_v32, %v2210_v14 }
  0xfe   : > { %2844 = vst [vmem:[#allocation13_spill] sm:$0xff] %v2402_v50  ;;  %v1100_v27 = vmul.f32 %v2280_v55, %v981_v11  ;;  %v1101_v3 = vmul.f32 %v2282_v57, %v981_v11  ;;  %v916_v11 = vadd.f32 %v2292_v61, %v666_v12 }
  0xff   : > { %1319 = vst [vmem:[%s2322_s26 + $0x8] sm:$0xff] %v1287_v56  ;;  %v1160_v44 = vadd.f32 %v1096_v2, %v795_v8  ;;  %v1161_v33 = vadd.f32 %v1097_v53, %v884_v63  ;;  %v647_v8 = vmul.f32 %v2249_v32, %v2179_v21  ;;  %v646_v63 = vmul.f32 %v2251_v37, %v2210_v14  ;;  %v2421_v2 = vpop.f32.mrf.mxu2 }
 0x100   : > { %v1164_v31 = vadd.f32 %v1100_v27, %v800_v10  ;;  %v1165_v49 = vadd.f32 %v1101_v3, %v889_v51  ;;  %v827_v53 = vadd.f32 %v2284_v58, %v665_v36  ;;  %v2427_v51 = vpop.f32.mrf.mxu3  ;;  %v802_v3 = vadd.f32 %v801_v26, %v645_v35 }
 0x101   : > { %v1230_v40 = vadd.f32 %v2294_v48, %v1160_v44  ;;  %v1231_v52 = vadd.f32 %v2296_v62, %v1161_v33  ;;  %v891_v44 = vadd.f32 %v890_v5, %v646_v63  ;;  %v1104_v21 = vmul.f32 %v2280_v55, %v2356_v6 }
 0x102   : > { %v1234_v38 = vadd.f32 %v2294_v48, %v1164_v31  ;;  %v1235_v23 = vadd.f32 %v2296_v62, %v1165_v49  ;;  %v1105_v58 = vmul.f32 %v2282_v57, %v2356_v6  ;;  %v893_v26 = vpop.f32.mrf.mxu1 }
 0x103   : > { %v1290_v56 = vpack.c.bf16 %v1231_v52, %v1230_v40  ;;  %v804_v52 = vpop.f32.mrf.mxu0 }
 0x104   : > { %v1292_v10 = vpack.c.bf16 %v1235_v23, %v1234_v38  ;;  %v985_v27 = vpop.permute.xlu1 %984  ;;  %v805_v12 = vadd.f32 %v804_v52, %v647_v8  ;;  %v894_v38 = vadd.f32 %v893_v26, %v648_v13  ;;  %v2449_v13 = vmul.f32 %v2249_v32, %v2186_v20 }
 0x105   : > { %1322 = vst [vmem:[%s2322_s26 + $0x20] sm:$0xff] %v1290_v56  ;;  %v1102_v14 = vmul.f32 %v2280_v55, %v985_v27  ;;  %v1103_v33 = vmul.f32 %v2282_v57, %v985_v27  ;;  %v1025_v31 = vpop.permute.xlu2 %1024  ;;  %v993_v49 = vpop.permute.xlu0 %992 }
 0x106   : > { %1324 = vst [vmem:[%s2322_s26 + $0x30] sm:$0xff] %v1292_v10  ;;  %v1122_v61 = vmul.f32 %v2280_v55, %v1025_v31  ;;  %v1123_v40 = vmul.f32 %v2282_v57, %v1025_v31  ;;  %v1168_v27 = vadd.f32 %v1104_v21, %v805_v12  ;;  %v1169_v50 = vadd.f32 %v1105_v58, %v894_v38 }
 0x107   : > { %v1166_v5 = vadd.f32 %v1102_v14, %v802_v3  ;;  %v1167_v36 = vadd.f32 %v1103_v33, %v891_v44  ;;  %v2445_v8 = vpop.f32.mrf.mxu2  ;;  %v649_v21 = vmul.f32 %v2249_v32, %v2227_v28  ;;  %v650_v58 = vmul.f32 %v2251_v37, %v2227_v28 }
 0x108   : > { %v1186_v23 = vadd.f32 %v1122_v61, %v827_v53  ;;  %v1187_v35 = vadd.f32 %v1123_v40, %v916_v11  ;;  %v1238_v4 = vadd.f32 %v2294_v48, %v1168_v27  ;;  %v1239_v3 = vadd.f32 %v2296_v62, %v1169_v50  ;;  %v2455_v14 = vpop.f32.mrf.mxu3 }
 0x109   : > { %v1236_v63 = vadd.f32 %v2294_v48, %v1166_v5  ;;  %v1237_v56 = vadd.f32 %v2296_v62, %v1167_v36  ;;  %v671_v53 = vmul.f32 %v2249_v32, %v2219_v15  ;;  %v672_v11 = vmul.f32 %v2251_v37, %v2219_v15 }
 0x10a   : > { %v1256_v6 = vadd.f32 %v2294_v48, %v1186_v23  ;;  %v1257_v10 = vadd.f32 %v2296_v62, %v1187_v35  ;;  %v2459_v50 = vmul.f32 %v2251_v37, %v2186_v20  ;;  %v1294_v61 = vpack.c.bf16 %v1239_v3, %v1238_v4  ;;  %v895_v12 = vpop.f32.mrf.mxu1 }
 0x10b   : > { %v1293_v31 = vpack.c.bf16 %v1237_v56, %v1236_v63  ;;  %v835_v15 = vadd.f32 %v2344_v43, %v671_v53  ;;  %v924_v26 = vadd.f32 %v2351_v39, %v672_v11  ;;  %v806_v36 = vpop.f32.mrf.mxu0  ;;  %v1106_v38 = vmul.f32 %v2280_v55, %v993_v49 }
 0x10c   : > { %v1303_v44 = vpack.c.bf16 %v1257_v10, %v1256_v6  ;;  %v997_v33 = vpop.permute.xlu1 %996  ;;  %v1107_v28 = vmul.f32 %v2282_v57, %v993_v49  ;;  %1326 = vst [vmem:[%s2322_s26 + $0x40] sm:$0xff] %v1294_v61  ;;  %v807_v4 = vadd.f32 %v806_v36, %v649_v21  ;;  %v896_v23 = vadd.f32 %v895_v12, %v650_v58 }
 0x10d   : > { %1325 = vst [vmem:[%s2322_s26 + $0x38] sm:$0xff] %v1293_v31  ;;  %v1037_v40 = vpop.permute.xlu2 %1036  ;;  %v2466_v52 = vpop.permute.xlu0 %1004  ;;  %v2478_v35 = vmul.f32 %v2249_v32, %v2197_v0  ;;  %v2482_v43 = vmul.f32 %v2251_v37, %v2197_v0  ;;  %v651_v56 = vmul.f32 %v2249_v32, %v2221_v16  ;;  %v652_v27 = vmul.f32 %v2251_v37, %v2221_v16 }
 0x10e   : > { %1335 = vst [vmem:[%s2322_s26 + $0x88] sm:$0xff] %v1303_v44  ;;  %v1128_v20 = vmul.f32 %v2280_v55, %v1037_v40  ;;  %v1129_v5 = vmul.f32 %v2282_v57, %v1037_v40  ;;  %v1170_v49 = vadd.f32 %v1106_v38, %v807_v4  ;;  %v1171_v6 = vadd.f32 %v1107_v28, %v896_v23 }
 0x10f   : > { %v677_v10 = vmul.f32 %v2249_v32, %v2230_v22  ;;  %v678_v31 = vmul.f32 %v2251_v37, %v2230_v22  ;;  %v2496_v53 = vmul.f32 %v2249_v32, %v2234_v29  ;;  %v2500_v11 = vmul.f32 %v2251_v37, %v2234_v29  ;;  %v2504_v21 = vpop.f32.mrf.mxu2 }
 0x110   : > { %v1192_v39 = vadd.f32 %v1128_v20, %v835_v15  ;;  %v1193_v63 = vadd.f32 %v1129_v5, %v924_v26  ;;  %v1240_v16 = vadd.f32 %v2294_v48, %v1170_v49  ;;  %v1241_v44 = vadd.f32 %v2296_v62, %v1171_v6  ;;  %v2516_v40 = vpop.f32.mrf.mxu3 }
 0x111   : > { %v2508_v22 = vmul.f32 %v2249_v32, %v2237_v18  ;;  %v2512_v58 = vmul.f32 %v2251_v37, %v2237_v18  ;;  %v683_v61 = vmul.f32 %v2249_v32, %v2239_v19  ;;  %v684_v26 = vmul.f32 %v2251_v37, %v2239_v19 }
 0x112   : > { %v1262_v3 = vadd.f32 %v2294_v48, %v1192_v39  ;;  %v1263_v0 = vadd.f32 %v2296_v62, %v1193_v63  ;;  %v2524_v20 = vmul.f32 %v2249_v32, %v2244_v30  ;;  %v2528_v18 = vmul.f32 %v2251_v37, %v2244_v30  ;;  %v898_v39 = vpop.f32.mrf.mxu1 }
 0x113   : > { %v1295_v5 = vpack.c.bf16 %v1241_v44, %v1240_v16  ;;  %v842_v38 = vadd.f32 %v2421_v2, %v677_v10  ;;  %v931_v28 = vadd.f32 %v2427_v51, %v678_v31  ;;  %v809_v23 = vpop.f32.mrf.mxu0  ;;  %v1108_v63 = vmul.f32 %v2280_v55, %v997_v33 }
 0x114   : > { %v1306_v29 = vpack.c.bf16 %v1263_v0, %v1262_v3  ;;  %v2518_v15 = vpop.permute.xlu1 %1008  ;;  %2845 = vst [vmem:[#allocation14_spill] sm:$0xff] %v2528_v18  ;;  %v1109_v30 = vmul.f32 %v2282_v57, %v997_v33  ;;  %v810_v49 = vadd.f32 %v809_v23, %v651_v56  ;;  %v899_v6 = vadd.f32 %v898_v39, %v652_v27 }
 0x115   : > { %v1049_v36 = vpop.permute.xlu2 %1048  ;;  %v2530_v12 = vpop.permute.xlu0 %1016  ;;  %1327 = vst [vmem:[%s2322_s26 + $0x48] sm:$0xff] %v1295_v5  ;;  %v2542_v3 = vmul.f32 %v2249_v32, %v2260_v42  ;;  %v2546_v2 = vmul.f32 %v2251_v37, %v2260_v42  ;;  %v2550_v31 = vmul.f32 %v2249_v32, %v2278_v54  ;;  %v2554_v33 = vmul.f32 %v2251_v37, %v2278_v54 }
 0x116   : > { %1338 = vst [vmem:[%s2322_s26 + $0xa0] sm:$0xff] %v1306_v29  ;;  %v1134_v4 = vmul.f32 %v2280_v55, %v1049_v36  ;;  %v1135_v19 = vmul.f32 %v2282_v57, %v1049_v36  ;;  %v1172_v56 = vadd.f32 %v1108_v63, %v810_v49  ;;  %v1173_v27 = vadd.f32 %v1109_v30, %v899_v6 }
 0x117   : > { %v673_v0 = vmul.f32 %v2249_v32, %v2290_v60  ;;  %v674_v16 = vmul.f32 %v2251_v37, %v2290_v60  ;;  %v2564_v29 = vmul.f32 %v2249_v32, %v2309_v17  ;;  %v2568_v54 = vmul.f32 %v2251_v37, %v2309_v17 }
 0x118   : > { %v1198_v51 = vadd.f32 %v1134_v4, %v842_v38  ;;  %v1199_v10 = vadd.f32 %v1135_v19, %v931_v28  ;;  %v1242_v5 = vadd.f32 %v2294_v48, %v1172_v56  ;;  %v1243_v36 = vadd.f32 %v2296_v62, %v1173_v27  ;;  %v849_v38 = vpop.f32.mrf.mxu2  ;;  %v938_v23 = vpop.f32.mrf.mxu3 }
 0x119   : > { %v1110_v60 = vmul.f32 %v2280_v55, %v2376_v1  ;;  %v1111_v28 = vmul.f32 %v2282_v57, %v2376_v1  ;;  %v850_v19 = vadd.f32 %v849_v38, %v683_v61  ;;  %v939_v17 = vadd.f32 %v938_v23, %v684_v26 }
 0x11a   : > { %v1268_v42 = vadd.f32 %v2294_v48, %v1198_v51  ;;  %v1269_v44 = vadd.f32 %v2296_v62, %v1199_v10  ;;  %v1296_v63 = vpack.c.bf16 %v1243_v36, %v1242_v5 }
 0x11b   : > { %v811_v27 = vpop.f32.mrf.mxu0 }
 0x11c   : > { %v1309_v4 = vpack.c.bf16 %v1269_v44, %v1268_v42  ;;  %v1021_v39 = vpop.permute.xlu1 %1020  ;;  %v900_v42 = vpop.f32.mrf.mxu1  ;;  %1328 = vst [vmem:[%s2322_s26 + $0x50] sm:$0xff] %v1296_v63  ;;  %v812_v5 = vadd.f32 %v811_v27, %v2449_v13 }
 0x11d   : > { %v1120_v30 = vmul.f32 %v2280_v55, %v1021_v39  ;;  %v1121_v49 = vmul.f32 %v2282_v57, %v1021_v39  ;;  %v1061_v6 = vpop.permute.xlu2 %1060  ;;  %v1029_v51 = vpop.permute.xlu0 %1028  ;;  %v901_v36 = vadd.f32 %v900_v42, %v2459_v50 }
 0x11e   : > { %1341 = vst [vmem:[%s2322_s26 + $0xb8] sm:$0xff] %v1309_v4  ;;  %v1140_v10 = vmul.f32 %v2280_v55, %v1061_v6  ;;  %v1141_v56 = vmul.f32 %v2282_v57, %v1061_v6  ;;  %v1124_v1 = vmul.f32 %v2280_v55, %v1029_v51  ;;  %v1125_v61 = vmul.f32 %v2282_v57, %v1029_v51 }
 0x11f   : > { %v1184_v26 = vadd.f32 %v1120_v30, %v2263_v45  ;;  %v1185_v44 = vadd.f32 %v1121_v49, %v2265_v47  ;;  %v1174_v18 = vadd.f32 %v1110_v60, %v812_v5  ;;  %v1175_v63 = vadd.f32 %v1111_v28, %v901_v36 }
 0x120   : > { %v1204_v38 = vadd.f32 %v1140_v10, %v850_v19  ;;  %v1205_v4 = vadd.f32 %v1141_v56, %v939_v17  ;;  %v1188_v23 = vadd.f32 %v1124_v1, %v2316_v24  ;;  %v1189_v39 = vadd.f32 %v1125_v61, %v2320_v41  ;;  %v2600_v60 = vpop.f32.mrf.mxu2  ;;  %v2605_v56 = vpop.f32.mrf.mxu3 }
 0x121   : > { %v1254_v6 = vadd.f32 %v2294_v48, %v1184_v26  ;;  %v1255_v51 = vadd.f32 %v2296_v62, %v1185_v44  ;;  %v679_v24 = vmul.f32 %v2249_v32, %v2314_v25  ;;  %v1244_v41 = vadd.f32 %v2294_v48, %v1174_v18 }
 0x122   : > { %v1274_v45 = vadd.f32 %v2294_v48, %v1204_v38  ;;  %v1275_v47 = vadd.f32 %v2296_v62, %v1205_v4  ;;  %v1258_v13 = vadd.f32 %v2294_v48, %v1188_v23  ;;  %v1259_v50 = vadd.f32 %v2296_v62, %v1189_v39  ;;  %v2846_v23 = vld [vmem:[#allocation8_spill] sm:$0xff] }
 0x123   : > { %v1302_v19 = vpack.c.bf16 %v1255_v51, %v1254_v6  ;;  %v1245_v17 = vadd.f32 %v2296_v62, %v1175_v63  ;;  %v680_v28 = vmul.f32 %v2251_v37, %v2314_v25  ;;  %v837_v30 = vadd.f32 %v2364_v34, %v673_v0 }
 0x124   : > { %v1312_v49 = vpack.c.bf16 %v1275_v47, %v1274_v45  ;;  %v1304_v10 = vpack.c.bf16 %v1259_v50, %v1258_v13  ;;  %v1033_v1 = vpop.permute.xlu1 %1032  ;;  %v926_v61 = vadd.f32 %v2368_v46, %v674_v16  ;;  %v1112_v25 = vmul.f32 %v2280_v55, %v2466_v52  ;;  %v814_v46 = vpop.f32.mrf.mxu0 }
 0x125   : > { %1334 = vst [vmem:[%s2322_s26 + $0x80] sm:$0xff] %v1302_v19  ;;  %v1297_v18 = vpack.c.bf16 %v1245_v17, %v1244_v41  ;;  %v1126_v27 = vmul.f32 %v2280_v55, %v1033_v1  ;;  %v1127_v42 = vmul.f32 %v2282_v57, %v1033_v1  ;;  %v1041_v26 = vpop.permute.xlu0 %1040  ;;  %v1113_v34 = vmul.f32 %v2282_v57, %v2466_v52  ;;  %v903_v16 = vpop.f32.mrf.mxu1  ;;  %v2848_v19 = vld [vmem:[#allocation11_spill] sm:$0xff] }
 0x126   : > { %1344 = vst [vmem:[%s2322_s26 + $0xd0] sm:$0xff] %v1312_v49  ;;  %v1130_v0 = vmul.f32 %v2280_v55, %v1041_v26  ;;  %v1131_v44 = vmul.f32 %v2282_v57, %v1041_v26  ;;  %v815_v38 = vadd.f32 %v814_v46, %v2508_v22  ;;  %v904_v4 = vadd.f32 %v903_v16, %v2512_v58  ;;  %v2847_v22 = vld [vmem:[#allocation9_spill] sm:$0xff] }
 0x127   : > { %1336 = vst [vmem:[%s2322_s26 + $0x90] sm:$0xff] %v1304_v10  ;;  %v1190_v5 = vadd.f32 %v1126_v27, %v2337_v7  ;;  %v1191_v36 = vadd.f32 %v1127_v42, %v2339_v9  ;;  %v2625_v39 = vmul.f32 %v2249_v32, %v2846_v23  ;;  %v2629_v52 = vmul.f32 %v2251_v37, %v2846_v23 }
 0x128   : > { %1329 = vst [vmem:[%s2322_s26 + $0x58] sm:$0xff] %v1297_v18  ;;  %v1194_v6 = vadd.f32 %v1130_v0, %v837_v30  ;;  %v1195_v51 = vadd.f32 %v1131_v44, %v926_v61  ;;  %v1176_v9 = vadd.f32 %v1112_v25, %v815_v38  ;;  %v1177_v45 = vadd.f32 %v1113_v34, %v904_v4  ;;  %v2646_v10 = vpop.f32.mrf.mxu2  ;;  %v2849_v61 = vld [vmem:[#allocation12_spill] sm:$0xff]  ;;  %v2653_v26 = vpop.f32.mrf.mxu3  ;;  %v2850_v4 = vld [vmem:[#allocation13_spill] sm:$0xff] }
 0x129   : > { %v1260_v63 = vadd.f32 %v2294_v48, %v1190_v5  ;;  %v1261_v7 = vadd.f32 %v2296_v62, %v1191_v36  ;;  %v685_v58 = vmul.f32 %v2249_v32, %v2847_v22  ;;  %v686_v47 = vmul.f32 %v2251_v37, %v2847_v22 }
 0x12a   : > { %v1264_v13 = vadd.f32 %v2294_v48, %v1194_v6  ;;  %v1265_v50 = vadd.f32 %v2296_v62, %v1195_v51  ;;  %v2642_v41 = vmul.f32 %v2249_v32, %v2848_v19  ;;  %v1246_v30 = vadd.f32 %v2294_v48, %v1176_v9 }
 0x12b   : > { %v1305_v17 = vpack.c.bf16 %v1261_v7, %v1260_v63  ;;  %v1247_v49 = vadd.f32 %v2296_v62, %v1177_v45  ;;  %v840_v1 = vadd.f32 %v2391_v59, %v2550_v31  ;;  %v929_v18 = vadd.f32 %v2849_v61, %v2554_v33  ;;  %v1073_v63 = vpop.permute.xlu2 %1072 }
 0x12c   : > { %v845_v27 = vadd.f32 %v2445_v8, %v679_v24  ;;  %v1307_v42 = vpack.c.bf16 %v1265_v50, %v1264_v13  ;;  %v1045_v25 = vpop.permute.xlu1 %1044  ;;  %v934_v34 = vadd.f32 %v2455_v14, %v680_v28  ;;  %v1114_v59 = vmul.f32 %v2280_v55, %v2518_v15  ;;  %v816_v24 = vpop.f32.mrf.mxu0 }
 0x12d   : > { %1337 = vst [vmem:[%s2322_s26 + $0x98] sm:$0xff] %v1305_v17  ;;  %v1298_v0 = vpack.c.bf16 %v1247_v49, %v1246_v30  ;;  %v1132_v44 = vmul.f32 %v2280_v55, %v1045_v25  ;;  %v1133_v46 = vmul.f32 %v2282_v57, %v1045_v25  ;;  %v1053_v16 = vpop.permute.xlu0 %1052  ;;  %v1115_v8 = vmul.f32 %v2282_v57, %v2518_v15  ;;  %v905_v14 = vpop.f32.mrf.mxu1 }
 0x12e   : > { %1339 = vst [vmem:[%s2322_s26 + $0xa8] sm:$0xff] %v1307_v42  ;;  %v1136_v31 = vmul.f32 %v2280_v55, %v1053_v16  ;;  %v1137_v33 = vmul.f32 %v2282_v57, %v1053_v16  ;;  %v817_v36 = vadd.f32 %v816_v24, %v2496_v53  ;;  %v906_v38 = vadd.f32 %v905_v14, %v2500_v11 }
 0x12f   : > { %1330 = vst [vmem:[%s2322_s26 + $0x60] sm:$0xff] %v1298_v0  ;;  %v1196_v28 = vadd.f32 %v1132_v44, %v840_v1  ;;  %v1197_v5 = vadd.f32 %v1133_v46, %v929_v18  ;;  %v1116_v23 = vmul.f32 %v2280_v55, %v2850_v4  ;;  %v1117_v15 = vmul.f32 %v2282_v57, %v2850_v4 }
 0x130   : > { %v1200_v6 = vadd.f32 %v1136_v31, %v845_v27  ;;  %v1201_v51 = vadd.f32 %v1137_v33, %v934_v34  ;;  %v1178_v45 = vadd.f32 %v1114_v59, %v817_v36  ;;  %v1179_v22 = vadd.f32 %v1115_v8, %v906_v38  ;;  %v856_v61 = vpop.f32.mrf.mxu2 }
 0x131   : > { %v1266_v7 = vadd.f32 %v2294_v48, %v1196_v28  ;;  %v1267_v9 = vadd.f32 %v2296_v62, %v1197_v5  ;;  %v847_v53 = vadd.f32 %v2504_v21, %v2564_v29  ;;  %v936_v11 = vadd.f32 %v2516_v40, %v2568_v54  ;;  %v945_v54 = vpop.f32.mrf.mxu3 }
 0x132   : > { %v1270_v13 = vadd.f32 %v2294_v48, %v1200_v6  ;;  %v1271_v50 = vadd.f32 %v2296_v62, %v1201_v51  ;;  %v852_v17 = vadd.f32 %v2600_v60, %v685_v58  ;;  %v1248_v49 = vadd.f32 %v2294_v48, %v1178_v45 }
 0x133   : > { %v1308_v30 = vpack.c.bf16 %v1267_v9, %v1266_v7  ;;  %v1249_v1 = vadd.f32 %v2296_v62, %v1179_v22  ;;  %v1146_v18 = vmul.f32 %v2280_v55, %v1073_v63  ;;  %v1147_v21 = vmul.f32 %v2282_v57, %v1073_v63 }
 0x134   : > { %v1310_v29 = vpack.c.bf16 %v1271_v50, %v1270_v13  ;;  %v857_v40 = vadd.f32 %v856_v61, %v2542_v3  ;;  %v1057_v27 = vpop.permute.xlu1 %1056  ;;  %v946_v60 = vadd.f32 %v945_v54, %v2546_v2  ;;  %v941_v0 = vadd.f32 %v2605_v56, %v686_v47  ;;  %v819_v16 = vpop.f32.mrf.mxu0 }
 0x135   : > { %1340 = vst [vmem:[%s2322_s26 + $0xb0] sm:$0xff] %v1308_v30  ;;  %v1299_v42 = vpack.c.bf16 %v1249_v1, %v1248_v49  ;;  %v1138_v58 = vmul.f32 %v2280_v55, %v1057_v27  ;;  %v1139_v25 = vmul.f32 %v2282_v57, %v1057_v27  ;;  %v1065_v34 = vpop.permute.xlu0 %1064  ;;  %v908_v59 = vpop.f32.mrf.mxu1  ;;  %v820_v2 = vadd.f32 %v819_v16, %v2478_v35 }
 0x136   : > { %1342 = vst [vmem:[%s2322_s26 + $0xc0] sm:$0xff] %v1310_v29  ;;  %v1210_v44 = vadd.f32 %v1146_v18, %v857_v40  ;;  %v1142_v46 = vmul.f32 %v2280_v55, %v1065_v34  ;;  %v1143_v3 = vmul.f32 %v2282_v57, %v1065_v34  ;;  %v1211_v8 = vadd.f32 %v1147_v21, %v946_v60  ;;  %v2851_v29 = vld [vmem:[#allocation14_spill] sm:$0xff] }
 0x137   : > { %1331 = vst [vmem:[%s2322_s26 + $0x68] sm:$0xff] %v1299_v42  ;;  %v1202_v31 = vadd.f32 %v1138_v58, %v847_v53  ;;  %v1203_v33 = vadd.f32 %v1139_v25, %v936_v11  ;;  %v909_v56 = vadd.f32 %v908_v59, %v2482_v43  ;;  %v1180_v38 = vadd.f32 %v1116_v23, %v820_v2  ;;  %v2852_v25 = vld [vmem:[#allocation10_spill] sm:$0xff] }
 0x138   : > { %v1280_v24 = vadd.f32 %v2294_v48, %v1210_v44  ;;  %v1206_v14 = vadd.f32 %v1142_v46, %v852_v17  ;;  %v1207_v28 = vadd.f32 %v1143_v3, %v941_v0  ;;  %v1281_v47 = vadd.f32 %v2296_v62, %v1211_v8  ;;  %v859_v45 = vpop.f32.mrf.mxu2 }
 0x139   : > { %v1272_v5 = vadd.f32 %v2294_v48, %v1202_v31  ;;  %v1273_v36 = vadd.f32 %v2296_v62, %v1203_v33  ;;  %v692_v4 = vmul.f32 %v2251_v37, %v2848_v19  ;;  %v1181_v51 = vadd.f32 %v1117_v15, %v909_v56  ;;  %v948_v11 = vpop.f32.mrf.mxu3 }
 0x13a   : > { %v1276_v6 = vadd.f32 %v2294_v48, %v1206_v14  ;;  %v1277_v35 = vadd.f32 %v2296_v62, %v1207_v28  ;;  %v1118_v63 = vmul.f32 %v2280_v55, %v2530_v12  ;;  %v1315_v43 = vpack.c.bf16 %v1281_v47, %v1280_v24 }
 0x13b   : > { %v1311_v7 = vpack.c.bf16 %v1273_v36, %v1272_v5  ;;  %v1250_v9 = vadd.f32 %v2294_v48, %v1180_v38  ;;  %v855_v23 = vadd.f32 %v2646_v10, %v2625_v39  ;;  %v1251_v19 = vadd.f32 %v2296_v62, %v1181_v51 }
 0x13c   : > { %v1313_v22 = vpack.c.bf16 %v1277_v35, %v1276_v6  ;;  %v860_v53 = vadd.f32 %v859_v45, %v2642_v41  ;;  %v1069_v15 = vpop.permute.xlu1 %1068  ;;  %v944_v13 = vadd.f32 %v2653_v26, %v2629_v52  ;;  %1347 = vst [vmem:[%s2322_s26 + $0xe8] sm:$0xff] %v1315_v43  ;;  %v949_v50 = vadd.f32 %v948_v11, %v692_v4  ;;  %v821_v61 = vpop.f32.mrf.mxu0 }
 0x13d   : > { %v1144_v17 = vmul.f32 %v2280_v55, %v1069_v15  ;;  %v1145_v30 = vmul.f32 %v2282_v57, %v1069_v15  ;;  %v1077_v49 = vpop.permute.xlu0 %1076  ;;  %v1119_v39 = vmul.f32 %v2282_v57, %v2530_v12  ;;  %1343 = vst [vmem:[%s2322_s26 + $0xc8] sm:$0xff] %v1311_v7  ;;  %v1300_v10 = vpack.c.bf16 %v1251_v19, %v1250_v9  ;;  %v910_v18 = vpop.f32.mrf.mxu1 }
 0x13e   : > { %v1148_v41 = vmul.f32 %v2280_v55, %v1077_v49  ;;  %v1149_v1 = vmul.f32 %v2282_v57, %v1077_v49  ;;  %1345 = vst [vmem:[%s2322_s26 + $0xd8] sm:$0xff] %v1313_v22  ;;  %v822_v21 = vadd.f32 %v821_v61, %v2524_v20  ;;  %v911_v40 = vadd.f32 %v910_v18, %v2851_v29 }
 0x13f   : > { %v1208_v52 = vadd.f32 %v1144_v17, %v855_v23  ;;  %v1209_v26 = vadd.f32 %v1145_v30, %v944_v13  ;;  %1332 = vst [vmem:[%s2322_s26 + $0x70] sm:$0xff] %v1300_v10  ;;  %v693_v34 = vmul.f32 %v2249_v32, %v2852_v25  ;;  %v694_v44 = vmul.f32 %v2251_v37, %v2852_v25 }
 0x140   : > { %v1212_v54 = vadd.f32 %v1148_v41, %v860_v53  ;;  %v1213_v27 = vadd.f32 %v1149_v1, %v949_v50  ;;  %v1182_v60 = vadd.f32 %v1118_v63, %v822_v21  ;;  %v1183_v58 = vadd.f32 %v1119_v39, %v911_v40  ;;  %v861_v59 = vpop.f32.mrf.mxu2 }
 0x141   : > { %v1278_v12 = vadd.f32 %v2294_v48, %v1208_v52  ;;  %v1279_v42 = vadd.f32 %v2296_v62, %v1209_v26  ;;  %v862_v31 = vadd.f32 %v861_v59, %v693_v34  ;;  %v950_v32 = vpop.f32.mrf.mxu3 }
 0x142   : > { %v1282_v0 = vadd.f32 %v2294_v48, %v1212_v54  ;;  %v1283_v20 = vadd.f32 %v2296_v62, %v1213_v27  ;;  %v1252_v3 = vadd.f32 %v2294_v48, %v1182_v60  ;;  %v1253_v16 = vadd.f32 %v2296_v62, %v1183_v58 }
 0x143   : > { %v1314_v46 = vpack.c.bf16 %v1279_v42, %v1278_v12  ;;  %v951_v24 = vadd.f32 %v950_v32, %v694_v44 }
 0x144   : > { %v1316_v8 = vpack.c.bf16 %v1283_v20, %v1282_v0  ;;  %v1081_v33 = vpop.permute.xlu1 %1080  ;;  %v1301_v2 = vpack.c.bf16 %v1253_v16, %v1252_v3 }
 0x145   : > { %1346 = vst [vmem:[%s2322_s26 + $0xe0] sm:$0xff] %v1314_v46  ;;  %v1150_v14 = vmul.f32 %v2280_v55, %v1081_v33  ;;  %v1151_v28 = vmul.f32 %v2282_v57, %v1081_v33 }
 0x146   : > { %1348 = vst [vmem:[%s2322_s26 + $0xf0] sm:$0xff] %v1316_v8 }
 0x147   : > { %1333 = vst [vmem:[%s2322_s26 + $0x78] sm:$0xff] %v1301_v2  ;;  %v1214_v37 = vadd.f32 %v1150_v14, %v862_v31  ;;  %v1215_v56 = vadd.f32 %v1151_v28, %v951_v24 }
 0x149   : > { %v1284_v47 = vadd.f32 %v2294_v48, %v1214_v37  ;;  %v1285_v5 = vadd.f32 %v2296_v62, %v1215_v56  ;;  %1357 = sbr.rel (!%p1950_p3) target bundleno = 366 (0x16e), region = 48 }
 0x14b   : > { %v1317_v36 = vpack.c.bf16 %v1285_v5, %v1284_v47 }
 0x14d   : > { %1349 = vst [vmem:[%s2322_s26 + $0xf8] sm:$0xff] %v1317_v36 }
 0x14e   : > { %s2868_s12 = smov (!%p1360_p4, %s1359_s12), 32 }
 0x14f   : > { %s1606_s13 = sshll.u32 %s2868_s12, 3 }
 0x150   : > { %s1364_s14 = ssub.s32 256, %s1606_s13 }
 0x151   : > { %s1365_s15 = sshll.u32 %s1364_s14, 4 }
 0x152   : > { %1366 = vsyncadd %s2747_s11, %s1365_s15  ;;  %s1607_s10 = sshll.u32 %s1842_s21, 6  ;;  %s1625_s17 = smul.u32 112, %s1846_s22 }
 0x153   : > { %s1374_s7 = sshll.u32 %s2322_s26, 4  ;;  %p2759_p3 = scmp.ne.s32.totalorder %s1606_s13, 0  ;;  %s2763_s7 = int_to_ptr.vmem [resolvable:$true] %s1374_s7 }
 0x154   : > { %s1370_s30 = sadd.s32 %s1625_s17, %s1607_s10  ;;  %s1587_s6 = sshll.u32 %s2868_s12, 7 }
 0x155   : > { %s1585_s9 = sshll.u32 %s1370_s30, 2  ;;  %s1749_s21 = sshra.s32 %s2763_s7, 4  ;;  %s1750_s21 = int_to_ptr.vmem [resolvable:$true] %s1749_s21 }
 0x156   : > { %s1372_s0 = scalar_lea.hbm %s2825_s5, %s1585_s9  ;;  %s1751_s22 = sshrl.u32 %s1587_s6, 4 }
 0x157   : > { %s1376_s1 = sshll.u32 %s1372_s0, 4  ;;  %s1756_s26 = scalar_lea.vmem %s1750_s21, %s1751_s22  ;;  %s2769_s1 = int_to_ptr.hbm [resolvable:$true] %s1376_s1 }
 0x158   : > { %p1757_p5 = scmp.ne.s32.totalorder %s1750_s21, %s1756_s26  ;;  %s1865_s13 = smov [#allocation5]  }
 0x159   : > { %s1760_s10 = scalar_lea.vmem %s1865_s13, 512 }
 0x15a   : > { %p1758_p6 = pnand %p1757_p5, %p2759_p3  ;;  %p1762_p9 = scmp.lt.s32.totalorder %s1760_s10, %s1756_s26 }
 0x15c   : > { %p1759_p7 = pneg %p1758_p6 }
 0x15e   : > { %p1764_p10 = pnand %p1762_p9, %p1759_p7 }
 0x160   : > { %1767 = shalt.err (!%p1764_p10)
}
 0x161   : > { %s1768_s17 = sshra.s32 %s2769_s1, 4  ;;  %s1779_s14 = scalar_lea.hbm %s2825_s5, 896  ;;  %s1769_s17 = int_to_ptr.hbm [resolvable:$true] %s1768_s17 }
 0x162   : > { %s1775_s0 = scalar_lea.hbm %s1769_s17, %s1751_s22  ;;  %p1780_p0 = scmp.lt.s32.totalorder %s1769_s17, %s2825_s5 }
 0x163   : > { %p1776_p11 = scmp.ne.s32.totalorder %s1769_s17, %s1775_s0  ;;  %p1781_p1 = scmp.lt.s32.totalorder %s1779_s14, %s1775_s0 }
 0x165   : > { %p1777_p12 = pnand %p1776_p11, %p2759_p3  ;;  %p1782_p2 = por %p1781_p1, %p1780_p0 }
 0x167   : > { %p1778_p13 = pneg %p1777_p12 }
 0x169   : > { %p1783_p4 = pnand %p1782_p2, %p1778_p13 }
 0x16b   : > { %1786 = shalt.err (!%p1783_p4)
}
 0x16c   : > { %s1866_s26 = smov 128   ;;  %s1867_s22 = smov 8  }
 0x16d   : > { %1382 = dma.vmem_to_hbm [thread:$0]  (%p2759_p3), %s2763_s7, %s1587_s6, %s2769_s1, %s2747_s11, %s1866_s26, %s1866_s26, %s1867_s22  }
 0x16e PF: > { %p1641_p5 = scmp.ge.s32.totalorder %s1858_s25, 2  ;;  %s1391_s13 = sand.u32 1, %s1830_s18  }
 0x16f   : > { %s1392_s10 = scalar_lea.sflag [#allocation4], %s1391_s13 }
 0x170   : > { %p1636_p6 = pnand %p1641_p5, %p1959_p8 }
 0x172   : > { %p1637_p7 = pneg %p1636_p6 }
 0x174   : > { %1825 = dma.done.wait (%p1637_p7), %s1392_s10, 4096  }
 0x175   : > { %1827 = vsyncadd (%p1637_p7), %s1392_s10, 4294963200  ;;  %s19_s25 = sadd.s32 1, %s1858_s25   ;;  %s2854_s18 = smov %s1834_s19 }
 0x176   : > { %p16_p9 = scmp.ge.s32.totalorder %s19_s25, 6   ;;  %s2855_s19 = smov %s1838_s20 }
 0x177   : > { %s2856_s20 = smov %s1980_s16  ;;  %s2857_s21 = smov %s1850_s23 }
 0x178   : > { %s2858_s22 = smov %s1854_s24  ;;  %s2859_s23 = smov %s2862_s28 }
 0x179   : > { %s2860_s24 = smov %s2866_s29  ;;  %18 = sbr.rel (!%p16_p9) target bundleno = 9 (0x9), region = 87 }
 0x17e   :  { %1398 = vsyncpa [#allocation3], 1 }
 0x17f   :  { %1400 = vsyncpa [#allocation3 + $0x1], 1 }
 0x180   :  { %1401 = vsyncpa [#allocation4], 1 }
 0x181   :  { %1403 = vsyncpa [#allocation4 + $0x1], 1 }

</bundles_post_ra>
